<compile_context>
chip_gen: v5e
topology: v5e:2x2
jax: 0.10.0
libtpu: 0.0.40
codegen_flags: <defaults>
</compile_context>

<pallas_src>
import functools
import math

import numpy as np
import jax
import jax.numpy as jnp
from jax.experimental import pallas as pl
from jax.experimental.pallas import tpu as pltpu

_INV_SQRT2 = 1.0 / math.sqrt(2.0)
_INV_SQRT2PI = 1.0 / math.sqrt(2.0 * math.pi)
_EPS = 1e-8

_MAX_BATCH_TILE = 512              # rows per batch tile (multiple of 8 sublanes)
_VMEM_CEILING = 64 * 1024 * 1024   # v7x physical VMEM per TensorCore


def _round_up(x, m):
    return ((x + m - 1) // m) * m


def _backbone_kernel(*refs, flags):
    """One batch tile of the fused MMCriticBackbone forward.

    refs layout:
      refs[0]            : means tile   (TB, in_pad)           f32  VMEM
      refs[1]            : vars  tile   (TB, in_pad)           f32  VMEM
      refs[2 + 2*l + 0]  : W_l^T        (in_pad_l, out_pad_l)  f32  VMEM (resident)
      refs[2 + 2*l + 1]  : b_l          (1, out_pad_l)         f32  VMEM (resident)
      refs[-2], refs[-1] : output means / vars tile (TB, out_pad_last)
    `flags[l]` is the static `isoutput` flag of layer l (loop is unrolled).
    """
    num_layers = len(flags)
    m = refs[0][...]
    v = refs[1][...]
    w_refs = refs[2:2 + 2 * num_layers]
    om_ref = refs[2 + 2 * num_layers]
    ov_ref = refs[3 + 2 * num_layers]

    # TODO(synk): for deep uniform-width backbones, stack hidden-layer weights into a
    # (L, H_pad, H_pad) array and iterate via a grid axis / fori_loop instead of this
    # static unroll (bounds live ranges and auto-prefetches layer l+1 weights).
    for li, isoutput in enumerate(flags):
        wt = w_refs[2 * li][...]        # (in_pad, out_pad) = W^T
        b = w_refs[2 * li + 1][...]     # (1, out_pad)

        mu = jnp.dot(m, wt, preferred_element_type=jnp.float32) + b
        # Square weights in-kernel (VPU mul hides under MXU/DMA slack) instead of
        # shipping a pre-squared copy from HBM.
        var = jnp.dot(v, wt * wt, preferred_element_type=jnp.float32)

        if isoutput:
            m, v = mu, var
        else:
            ve = var + _EPS
            inv_s = jax.lax.rsqrt(ve)             # EUP; replaces sqrt + divide
            s = ve * inv_s                        # == sqrt(var + eps)
            alpha = mu * inv_s
            # TODO(synk): if moment-match tolerance allows, swap erf for a
            # single-EUP approximation (sigmoid(1.702*alpha)) once VALU-bound.
            cdf = 0.5 * (1.0 + jax.lax.erf(alpha * _INV_SQRT2))
            pdf = _INV_SQRT2PI * jnp.exp(-0.5 * alpha * alpha)
            new_mean = mu * cdf + s * pdf
            # NOTE: mild catastrophic cancellation possible when var << mu^2;
            # the clamp keeps the result non-negative.
            new_var = (mu * mu + var) * cdf + mu * s * pdf - new_mean * new_mean
            m = new_mean
            v = jnp.maximum(new_var, 0.0)

    om_ref[...] = m
    ov_ref[...] = v


def init_params(key, input_dim, hidden_dims, output_dim):
    """nn.Linear-style init. Pre-transposes and lane-pads weights (no pre-squaring)."""
    dims = [input_dim] + list(hidden_dims)
    layer_dims = list(zip(dims[:-1], dims[1:]))
    flags = [False] * len(layer_dims)
    if output_dim is not None:
        layer_dims.append((dims[-1], output_dim))
        flags.append(True)

    params = []
    for (in_d, out_d), isout in zip(layer_dims, flags):
        key, kw, kb = jax.random.split(key, 3)
        bound = 1.0 / math.sqrt(in_d)
        W = jax.random.uniform(kw, (out_d, in_d), jnp.float32, -bound, bound)
        b = jax.random.uniform(kb, (out_d,), jnp.float32, -bound, bound)

        in_p = _round_up(in_d, 128)
        out_p = _round_up(out_d, 128)
        # Zero padding keeps the math exact: padded weight rows are zero, so padded
        # activation columns never leak into real outputs (invariant must hold if
        # the weight layout is ever changed).
        wt = jnp.zeros((in_p, out_p), jnp.float32).at[:in_d, :out_d].set(W.T)
        bp = jnp.zeros((1, out_p), jnp.float32).at[0, :out_d].set(b)
        # TODO(synk): optionally cast wt/bp to bf16 (MXU-native, halves weight bytes
        # again) after validating the variance path's bf16 error vs. tolerance.

        params.append({"W": W, "b": b, "wt": wt, "bp": bp,
                       "isoutput": isout, "in_dim": in_d, "out_dim": out_d})
    return params


@functools.partial(jax.jit, static_argnames=("flags", "out_dim"))
def _forward(means, vars_, weights, flags, out_dim):
    B, in_dim = means.shape
    num_layers = len(flags)
    in_pad = weights[0].shape[0]
    out_pad = weights[2 * (num_layers - 1)].shape[1]

    # Batch tile: multiple of 8 sublanes, capped so activations stay O(tile) in VMEM.
    tb = min(_round_up(B, 8), _MAX_BATCH_TILE)
    b_pad = _round_up(B, tb)
    grid = (b_pad // tb,)

    def pad_act(x):
        x = x.astype(jnp.float32)
        if b_pad != B or in_pad != in_dim:
            x = jnp.pad(x, ((0, b_pad - B), (0, in_pad - in_dim)))
        return x

    m_pad = pad_act(means)
    v_pad = pad_act(vars_)

    # BlockSpecs: batch-tiled activations, resident (constant-index) weights.
    act_in_spec = pl.BlockSpec((tb, in_pad), lambda i: (i, 0))
    act_out_spec = pl.BlockSpec((tb, out_pad), lambda i: (i, 0))
    w_specs = []
    for li in range(num_layers):
        ip, op = weights[2 * li].shape
        w_specs.append(pl.BlockSpec((ip, op), lambda i: (0, 0)))   # W^T, fetched once
        w_specs.append(pl.BlockSpec((1, op), lambda i: (0, 0)))    # bias, fetched once

    # Explicit VMEM budget: weights (x2 buffers to be safe), double-buffered
    # activation in/out tiles, and two live intermediate (mean, var) pairs.
    weight_bytes = 2 * sum(int(w.size) * w.dtype.itemsize for w in weights)
    act_bytes = 2 * 2 * tb * in_pad * 4 + 2 * 2 * tb * out_pad * 4
    max_feat = max(int(weights[2 * li].shape[1]) for li in range(num_layers))
    inter_bytes = 4 * tb * max_feat * 4
    vmem_limit = min(int((weight_bytes + act_bytes + inter_bytes) * 1.5) + (4 << 20),
                     _VMEM_CEILING)
    # TODO(synk): if weight_bytes alone approaches the 64 MiB v7x ceiling, switch the
    # weight specs to pl.ANY and stream per-layer with pltpu.emit_pipeline.

    out_means, out_vars = pl.pallas_call(
        functools.partial(_backbone_kernel, flags=flags),
        grid=grid,
        out_shape=(jax.ShapeDtypeStruct((b_pad, out_pad), jnp.float32),
                   jax.ShapeDtypeStruct((b_pad, out_pad), jnp.float32)),
        in_specs=[act_in_spec, act_in_spec] + w_specs,
        out_specs=(act_out_spec, act_out_spec),
        compiler_params=pltpu.CompilerParams(
            dimension_semantics=("parallel",),
            vmem_limit_bytes=vmem_limit),
    )(m_pad, v_pad, *weights)

    return out_means[:B, :out_dim], out_vars[:B, :out_dim]


def mm_critic_backbone(means, vars_, params):
    """Forward pass of MMCriticBackbone: all MMDetLayers in one fused kernel."""
    weights = tuple(w for p in params for w in (p["wt"], p["bp"]))
    flags = tuple(bool(p["isoutput"]) for p in params)
    out_dim = params[-1]["out_dim"]
    return _forward(means, vars_, weights, flags, out_dim)


def mm_critic_backbone_ref(means, vars_, params):
    """Pure-JAX reference (unpadded) for correctness checking."""
    m = means.astype(jnp.float32)
    v = vars_.astype(jnp.float32)
    hi = jax.lax.Precision.HIGHEST
    for p in params:
        W, b = p["W"], p["b"]
        mu = jnp.dot(m, W.T, precision=hi) + b
        var = jnp.dot(v, (W * W).T, precision=hi)
        if p["isoutput"]:
            m, v = mu, var
        else:
            s = jnp.sqrt(var + _EPS)
            alpha = mu / s
            cdf = 0.5 * (1.0 + jax.lax.erf(alpha * _INV_SQRT2))
            pdf = _INV_SQRT2PI * jnp.exp(-0.5 * alpha * alpha)
            nm = mu * cdf + s * pdf
            nv = (mu * mu + var) * cdf + mu * s * pdf - nm * nm
            m, v = nm, jnp.maximum(nv, 0.0)
    return m, v


if __name__ == "__main__":
    key = jax.random.PRNGKey(0)
    kp, km, kv = jax.random.split(key, 3)

    input_dim = 4
    hidden_dims = [32, 32]
    output_dim = 1
    batch = 2

    params = init_params(kp, input_dim, hidden_dims, output_dim)

    means = jax.random.normal(km, (batch, input_dim), jnp.float32)
    vars_ = jax.nn.softplus(jax.random.normal(kv, (batch, input_dim), jnp.float32))

    out_means, out_vars = mm_critic_backbone(means, vars_, params)
    jax.block_until_ready((out_means, out_vars))

    assert out_means.shape == (batch, output_dim)
    assert out_vars.shape == (batch, output_dim)

    ref_means, ref_vars = mm_critic_backbone_ref(means, vars_, params)
    np.testing.assert_allclose(np.asarray(out_means), np.asarray(ref_means),
                               rtol=1e-3, atol=1e-4)
    np.testing.assert_allclose(np.asarray(out_vars), np.asarray(ref_vars),
                               rtol=1e-3, atol=1e-4)

    print("KERNEL_OK")
</pallas_src>

<mosaic_0001>
module attributes {stable_mosaic.version = 11 : i64} {
  func.func @_backbone_kernel(%arg0: i32, %arg1: memref<8x128xf32, #tpu.memory_space<vmem>>, %arg2: memref<8x128xf32, #tpu.memory_space<vmem>>, %arg3: memref<128x128xf32, #tpu.memory_space<vmem>>, %arg4: memref<1x128xf32, #tpu.memory_space<vmem>>, %arg5: memref<128x128xf32, #tpu.memory_space<vmem>>, %arg6: memref<1x128xf32, #tpu.memory_space<vmem>>, %arg7: memref<128x128xf32, #tpu.memory_space<vmem>>, %arg8: memref<1x128xf32, #tpu.memory_space<vmem>>, %arg9: memref<8x128xf32, #tpu.memory_space<vmem>>, %arg10: memref<8x128xf32, #tpu.memory_space<vmem>>) attributes {dimension_semantics = [#tpu.dimension_semantics<parallel>], iteration_bounds = array<i64: 1>, scalar_prefetch = 0 : i64, scratch_operands = 0 : i64, tpu.core_type = #tpu.core_type<tc>, window_params = [{transform_indices = @transform_0, window_bounds = array<i64: 8, 128>}, {transform_indices = @transform_1, window_bounds = array<i64: 8, 128>}, {pipeline_mode = #tpu.pipeline_mode<synchronous>, transform_indices = @transform_2, window_bounds = array<i64: 128, 128>}, {pipeline_mode = #tpu.pipeline_mode<synchronous>, transform_indices = @transform_3, window_bounds = array<i64: 1, 128>}, {pipeline_mode = #tpu.pipeline_mode<synchronous>, transform_indices = @transform_4, window_bounds = array<i64: 128, 128>}, {pipeline_mode = #tpu.pipeline_mode<synchronous>, transform_indices = @transform_5, window_bounds = array<i64: 1, 128>}, {pipeline_mode = #tpu.pipeline_mode<synchronous>, transform_indices = @transform_6, window_bounds = array<i64: 128, 128>}, {pipeline_mode = #tpu.pipeline_mode<synchronous>, transform_indices = @transform_7, window_bounds = array<i64: 1, 128>}, {transform_indices = @transform_8, window_bounds = array<i64: 8, 128>}, {transform_indices = @transform_9, window_bounds = array<i64: 8, 128>}]} {
    %c0 = arith.constant 0 : index
    %c0_0 = arith.constant 0 : index
    %0 = vector.load %arg1[%c0, %c0_0] : memref<8x128xf32, #tpu.memory_space<vmem>>, vector<8x128xf32>
    %c0_1 = arith.constant 0 : index
    %c0_2 = arith.constant 0 : index
    %1 = vector.load %arg2[%c0_1, %c0_2] : memref<8x128xf32, #tpu.memory_space<vmem>>, vector<8x128xf32>
    %c0_3 = arith.constant 0 : index
    %c0_4 = arith.constant 0 : index
    %2 = vector.load %arg3[%c0_3, %c0_4] : memref<128x128xf32, #tpu.memory_space<vmem>>, vector<128x128xf32>
    %c0_5 = arith.constant 0 : index
    %c0_6 = arith.constant 0 : index
    %3 = vector.load %arg4[%c0_5, %c0_6] : memref<1x128xf32, #tpu.memory_space<vmem>>, vector<1x128xf32>
    %cst = arith.constant dense<0.000000e+00> : vector<8x128xf32>
    %4 = tpu.matmul %0, %2, %cst {dimension_numbers = #tpu.dot_dimension_numbers<[1], [0], [0], [1], [0, 0, 1, 1], [], []>} : vector<8x128xf32>, vector<128x128xf32>, vector<8x128xf32> -> vector<8x128xf32>
    %5 = vector.broadcast %3 : vector<1x128xf32> to vector<8x128xf32>
    %6 = arith.addf %4, %5 : vector<8x128xf32>
    %7 = arith.mulf %2, %2 : vector<128x128xf32>
    %cst_7 = arith.constant dense<0.000000e+00> : vector<8x128xf32>
    %8 = tpu.matmul %1, %7, %cst_7 {dimension_numbers = #tpu.dot_dimension_numbers<[1], [0], [0], [1], [0, 0, 1, 1], [], []>} : vector<8x128xf32>, vector<128x128xf32>, vector<8x128xf32> -> vector<8x128xf32>
    %cst_8 = arith.constant 9.99999993E-9 : f32
    %9 = vector.broadcast %cst_8 : f32 to vector<8x128xf32>
    %10 = arith.addf %8, %9 : vector<8x128xf32>
    %11 = math.rsqrt %10 : vector<8x128xf32>
    %12 = arith.mulf %10, %11 : vector<8x128xf32>
    %13 = arith.mulf %6, %11 : vector<8x128xf32>
    %cst_9 = arith.constant 0.707106769 : f32
    %14 = vector.broadcast %cst_9 : f32 to vector<8x128xf32>
    %15 = arith.mulf %13, %14 : vector<8x128xf32>
    %16 = math.erf %15 : vector<8x128xf32>
    %cst_10 = arith.constant 1.000000e+00 : f32
    %17 = vector.broadcast %cst_10 : f32 to vector<8x128xf32>
    %18 = arith.addf %17, %16 : vector<8x128xf32>
    %cst_11 = arith.constant 5.000000e-01 : f32
    %19 = vector.broadcast %cst_11 : f32 to vector<8x128xf32>
    %20 = arith.mulf %19, %18 : vector<8x128xf32>
    %cst_12 = arith.constant -5.000000e-01 : f32
    %21 = vector.broadcast %cst_12 : f32 to vector<8x128xf32>
    %22 = arith.mulf %21, %13 : vector<8x128xf32>
    %23 = arith.mulf %22, %13 : vector<8x128xf32>
    %24 = math.exp %23 : vector<8x128xf32>
    %cst_13 = arith.constant 0.398942292 : f32
    %25 = vector.broadcast %cst_13 : f32 to vector<8x128xf32>
    %26 = arith.mulf %25, %24 : vector<8x128xf32>
    %27 = arith.mulf %6, %20 : vector<8x128xf32>
    %28 = arith.mulf %12, %26 : vector<8x128xf32>
    %29 = arith.addf %27, %28 : vector<8x128xf32>
    %30 = arith.mulf %6, %6 : vector<8x128xf32>
    %31 = arith.addf %30, %8 : vector<8x128xf32>
    %32 = arith.mulf %31, %20 : vector<8x128xf32>
    %33 = arith.mulf %6, %12 : vector<8x128xf32>
    %34 = arith.mulf %33, %26 : vector<8x128xf32>
    %35 = arith.addf %32, %34 : vector<8x128xf32>
    %36 = arith.mulf %29, %29 : vector<8x128xf32>
    %37 = arith.subf %35, %36 : vector<8x128xf32>
    %cst_14 = arith.constant 0.000000e+00 : f32
    %38 = vector.broadcast %cst_14 : f32 to vector<8x128xf32>
    %39 = arith.maximumf %37, %38 : vector<8x128xf32>
    %c0_15 = arith.constant 0 : index
    %c0_16 = arith.constant 0 : index
    %40 = vector.load %arg5[%c0_15, %c0_16] : memref<128x128xf32, #tpu.memory_space<vmem>>, vector<128x128xf32>
    %c0_17 = arith.constant 0 : index
    %c0_18 = arith.constant 0 : index
    %41 = vector.load %arg6[%c0_17, %c0_18] : memref<1x128xf32, #tpu.memory_space<vmem>>, vector<1x128xf32>
    %cst_19 = arith.constant dense<0.000000e+00> : vector<8x128xf32>
    %42 = tpu.matmul %29, %40, %cst_19 {dimension_numbers = #tpu.dot_dimension_numbers<[1], [0], [0], [1], [0, 0, 1, 1], [], []>} : vector<8x128xf32>, vector<128x128xf32>, vector<8x128xf32> -> vector<8x128xf32>
    %43 = vector.broadcast %41 : vector<1x128xf32> to vector<8x128xf32>
    %44 = arith.addf %42, %43 : vector<8x128xf32>
    %45 = arith.mulf %40, %40 : vector<128x128xf32>
    %cst_20 = arith.constant dense<0.000000e+00> : vector<8x128xf32>
    %46 = tpu.matmul %39, %45, %cst_20 {dimension_numbers = #tpu.dot_dimension_numbers<[1], [0], [0], [1], [0, 0, 1, 1], [], []>} : vector<8x128xf32>, vector<128x128xf32>, vector<8x128xf32> -> vector<8x128xf32>
    %cst_21 = arith.constant 9.99999993E-9 : f32
    %47 = vector.broadcast %cst_21 : f32 to vector<8x128xf32>
    %48 = arith.addf %46, %47 : vector<8x128xf32>
    %49 = math.rsqrt %48 : vector<8x128xf32>
    %50 = arith.mulf %48, %49 : vector<8x128xf32>
    %51 = arith.mulf %44, %49 : vector<8x128xf32>
    %cst_22 = arith.constant 0.707106769 : f32
    %52 = vector.broadcast %cst_22 : f32 to vector<8x128xf32>
    %53 = arith.mulf %51, %52 : vector<8x128xf32>
    %54 = math.erf %53 : vector<8x128xf32>
    %cst_23 = arith.constant 1.000000e+00 : f32
    %55 = vector.broadcast %cst_23 : f32 to vector<8x128xf32>
    %56 = arith.addf %55, %54 : vector<8x128xf32>
    %cst_24 = arith.constant 5.000000e-01 : f32
    %57 = vector.broadcast %cst_24 : f32 to vector<8x128xf32>
    %58 = arith.mulf %57, %56 : vector<8x128xf32>
    %cst_25 = arith.constant -5.000000e-01 : f32
    %59 = vector.broadcast %cst_25 : f32 to vector<8x128xf32>
    %60 = arith.mulf %59, %51 : vector<8x128xf32>
    %61 = arith.mulf %60, %51 : vector<8x128xf32>
    %62 = math.exp %61 : vector<8x128xf32>
    %cst_26 = arith.constant 0.398942292 : f32
    %63 = vector.broadcast %cst_26 : f32 to vector<8x128xf32>
    %64 = arith.mulf %63, %62 : vector<8x128xf32>
    %65 = arith.mulf %44, %58 : vector<8x128xf32>
    %66 = arith.mulf %50, %64 : vector<8x128xf32>
    %67 = arith.addf %65, %66 : vector<8x128xf32>
    %68 = arith.mulf %44, %44 : vector<8x128xf32>
    %69 = arith.addf %68, %46 : vector<8x128xf32>
    %70 = arith.mulf %69, %58 : vector<8x128xf32>
    %71 = arith.mulf %44, %50 : vector<8x128xf32>
    %72 = arith.mulf %71, %64 : vector<8x128xf32>
    %73 = arith.addf %70, %72 : vector<8x128xf32>
    %74 = arith.mulf %67, %67 : vector<8x128xf32>
    %75 = arith.subf %73, %74 : vector<8x128xf32>
    %cst_27 = arith.constant 0.000000e+00 : f32
    %76 = vector.broadcast %cst_27 : f32 to vector<8x128xf32>
    %77 = arith.maximumf %75, %76 : vector<8x128xf32>
    %c0_28 = arith.constant 0 : index
    %c0_29 = arith.constant 0 : index
    %78 = vector.load %arg7[%c0_28, %c0_29] : memref<128x128xf32, #tpu.memory_space<vmem>>, vector<128x128xf32>
    %c0_30 = arith.constant 0 : index
    %c0_31 = arith.constant 0 : index
    %79 = vector.load %arg8[%c0_30, %c0_31] : memref<1x128xf32, #tpu.memory_space<vmem>>, vector<1x128xf32>
    %cst_32 = arith.constant dense<0.000000e+00> : vector<8x128xf32>
    %80 = tpu.matmul %67, %78, %cst_32 {dimension_numbers = #tpu.dot_dimension_numbers<[1], [0], [0], [1], [0, 0, 1, 1], [], []>} : vector<8x128xf32>, vector<128x128xf32>, vector<8x128xf32> -> vector<8x128xf32>
    %81 = vector.broadcast %79 : vector<1x128xf32> to vector<8x128xf32>
    %82 = arith.addf %80, %81 : vector<8x128xf32>
    %83 = arith.mulf %78, %78 : vector<128x128xf32>
    %cst_33 = arith.constant dense<0.000000e+00> : vector<8x128xf32>
    %84 = tpu.matmul %77, %83, %cst_33 {dimension_numbers = #tpu.dot_dimension_numbers<[1], [0], [0], [1], [0, 0, 1, 1], [], []>} : vector<8x128xf32>, vector<128x128xf32>, vector<8x128xf32> -> vector<8x128xf32>
    %c0_34 = arith.constant 0 : index
    %c0_35 = arith.constant 0 : index
    %85 = vector.load %arg9[%c0_34, %c0_35] : memref<8x128xf32, #tpu.memory_space<vmem>>, vector<8x128xf32>
    tpu.vector_store %arg9[%c0_34, %c0_35], %82 {strides = array<i32>} : memref<8x128xf32, #tpu.memory_space<vmem>>, vector<8x128xf32>,
    %c0_36 = arith.constant 0 : index
    %c0_37 = arith.constant 0 : index
    %86 = vector.load %arg10[%c0_36, %c0_37] : memref<8x128xf32, #tpu.memory_space<vmem>>, vector<8x128xf32>
    tpu.vector_store %arg10[%c0_36, %c0_37], %84 {strides = array<i32>} : memref<8x128xf32, #tpu.memory_space<vmem>>, vector<8x128xf32>,
    return
  }
  func.func @transform_0(%arg0: i32) -> (i32, i32) {
    %c0_i32 = arith.constant 0 : i32
    %c0_i32_0 = arith.constant 0 : i32
    return %arg0, %c0_i32 : i32, i32
  }
  func.func @transform_1(%arg0: i32) -> (i32, i32) {
    %c0_i32 = arith.constant 0 : i32
    %c0_i32_0 = arith.constant 0 : i32
    return %arg0, %c0_i32 : i32, i32
  }
  func.func @transform_2(%arg0: i32) -> (i32, i32) {
    %c0_i32 = arith.constant 0 : i32
    %c0_i32_0 = arith.constant 0 : i32
    %c0_i32_1 = arith.constant 0 : i32
    return %c0_i32, %c0_i32_0 : i32, i32
  }
  func.func @transform_3(%arg0: i32) -> (i32, i32) {
    %c0_i32 = arith.constant 0 : i32
    %c0_i32_0 = arith.constant 0 : i32
    %c0_i32_1 = arith.constant 0 : i32
    return %c0_i32, %c0_i32_0 : i32, i32
  }
  func.func @transform_4(%arg0: i32) -> (i32, i32) {
    %c0_i32 = arith.constant 0 : i32
    %c0_i32_0 = arith.constant 0 : i32
    %c0_i32_1 = arith.constant 0 : i32
    return %c0_i32, %c0_i32_0 : i32, i32
  }
  func.func @transform_5(%arg0: i32) -> (i32, i32) {
    %c0_i32 = arith.constant 0 : i32
    %c0_i32_0 = arith.constant 0 : i32
    %c0_i32_1 = arith.constant 0 : i32
    return %c0_i32, %c0_i32_0 : i32, i32
  }
  func.func @transform_6(%arg0: i32) -> (i32, i32) {
    %c0_i32 = arith.constant 0 : i32
    %c0_i32_0 = arith.constant 0 : i32
    %c0_i32_1 = arith.constant 0 : i32
    return %c0_i32, %c0_i32_0 : i32, i32
  }
  func.func @transform_7(%arg0: i32) -> (i32, i32) {
    %c0_i32 = arith.constant 0 : i32
    %c0_i32_0 = arith.constant 0 : i32
    %c0_i32_1 = arith.constant 0 : i32
    return %c0_i32, %c0_i32_0 : i32, i32
  }
  func.func @transform_8(%arg0: i32) -> (i32, i32) {
    %c0_i32 = arith.constant 0 : i32
    %c0_i32_0 = arith.constant 0 : i32
    return %arg0, %c0_i32 : i32, i32
  }
  func.func @transform_9(%arg0: i32) -> (i32, i32) {
    %c0_i32 = arith.constant 0 : i32
    %c0_i32_0 = arith.constant 0 : i32
    return %arg0, %c0_i32 : i32, i32
  }
}

</mosaic_0001>

<bundles_post_ra>
// kernel: _forward.1
= control target key start
LH: loop header
LB: loop body
LE: loop exit
PB: predicated region body
PF: predicated region fallthrough
CT: control target
= control target key end

     0   :  { %15 = vsyncpa [#allocation3], 0  ;;  %s735_s0 = inlined_call_operand.vmem [shape: f32[8,128], index: 0, kind: input, shape index: {}]   ;;  %s736_s1 = inlined_call_operand.vmem [shape: f32[8,128], index: 1, kind: input, shape index: {}]   ;;  %s737_s2 = inlined_call_operand.hbm [shape: f32[128,128], index: 2, kind: input, shape index: {}]   ;;  %s738_s3 = inlined_call_operand.vmem [shape: f32[1,128], index: 3, kind: input, shape index: {}]   ;;  %s739_s4 = inlined_call_operand.hbm [shape: f32[128,128], index: 4, kind: input, shape index: {}]   ;;  %s740_s5 = inlined_call_operand.vmem [shape: f32[1,128], index: 5, kind: input, shape index: {}]   ;;  %s741_s6 = inlined_call_operand.hbm [shape: f32[128,128], index: 6, kind: input, shape index: {}]   ;;  %s742_s7 = inlined_call_operand.vmem [shape: f32[1,128], index: 7, kind: input, shape index: {}]   ;;  %s743_s8 = inlined_call_operand.vmem [shape: f32[8,128], index: 8, kind: output, shape index: {0}]   ;;  %s744_s9 = inlined_call_operand.vmem [shape: f32[8,128], index: 9, kind: output, shape index: {1}]  }
   0x1   :  { %16 = vsyncpa [#allocation5], 0  ;;  %s40_s11 = sshll.u32 %s739_s4, 4  ;;  %s564_s12 = smov [#allocation4]   ;;  %s41_s11 = int_to_ptr.hbm [resolvable:$true] %s40_s11 }
   0x2   :  { %s42_s13 = sshll.u32 %s564_s12, 4  ;;  %s25_s16 = sshll.u32 %s737_s2, 4  ;;  %s43_s13 = int_to_ptr.vmem [resolvable:$true] %s42_s13  ;;  %s26_s16 = int_to_ptr.hbm [resolvable:$true] %s25_s16 }
   0x3   :  { %s565_s17 = smov 128   ;;  %s566_s18 = smov 8  }
   0x4   :  { %48 = dma.hbm_to_vmem [thread:$0]  %s41_s11, 2048, %s43_s13, [#allocation5], %s565_s17, %s565_s17, %s566_s18  }
   0x5   :  { %s567_s19 = smov [#allocation2]   ;;  %s55_s23 = sshll.u32 %s741_s6, 4  ;;  %s56_s23 = int_to_ptr.hbm [resolvable:$true] %s55_s23 }
   0x6   :  { %s27_s20 = sshll.u32 %s567_s19, 4  ;;  %s568_s4 = smov [#allocation6]   ;;  %s28_s20 = int_to_ptr.vmem [resolvable:$true] %s27_s20 }
   0x7   :  { %33 = dma.hbm_to_vmem [thread:$0]  %s26_s16, 2048, %s28_s20, [#allocation3], %s565_s17, %s565_s17, %s566_s18  }
   0x8   :  { %s57_s24 = sshll.u32 %s568_s4, 4  ;;  %s58_s24 = int_to_ptr.vmem [resolvable:$true] %s57_s24 }
   0x9   :  { %63 = dma.hbm_to_vmem [thread:$0]  %s56_s23, 2048, %s58_s24, [#allocation5], %s565_s17, %s565_s17, %s566_s18  }
   0xa   :  { %560 = dma.done.wait [#allocation3], 2048  }
   0xb   :  { %561 = vsyncadd [#allocation3], 4294965248 }
   0xc   :  { %562 = dma.done.wait [#allocation5], 4096  }
   0xd   :  { %563 = vsyncadd [#allocation5], 4294963200  ;;  %v95_v0 = vld [vmem:[#allocation2 + $0x78] sm:$0xff]  ;;  %v94_v1 = vld [vmem:[#allocation2 + $0x70] sm:$0xff] }
   0xe   :  { %v93_v2 = vld [vmem:[#allocation2 + $0x68] sm:$0xff]  ;;  %100 = vmatpush.msra.mxu0 %v95_v0  ;;  %v135_v3 = vmul.f32 %v95_v0, %v95_v0  ;;  %v134_v4 = vmul.f32 %v94_v1, %v94_v1  ;;  %v92_v5 = vld [vmem:[#allocation2 + $0x60] sm:$0xff]  ;;  %v91_v7 = vld [vmem:[#allocation2 + $0x58] sm:$0xff] }
   0xf   :  { %v133_v6 = vmul.f32 %v93_v2, %v93_v2  ;;  %v132_v8 = vmul.f32 %v92_v5, %v92_v5  ;;  %v90_v9 = vld [vmem:[#allocation2 + $0x50] sm:$0xff]  ;;  %v131_v10 = vmul.f32 %v91_v7, %v91_v7  ;;  %v89_v11 = vld [vmem:[#allocation2 + $0x48] sm:$0xff]  ;;  %v88_v13 = vld [vmem:[#allocation2 + $0x40] sm:$0xff] }
  0x10   :  { %101 = vmatpush.msra.mxu0 %v94_v1  ;;  %136 = vmatpush.msra.mxu1 %v135_v3  ;;  %v130_v12 = vmul.f32 %v90_v9, %v90_v9  ;;  %v129_v14 = vmul.f32 %v89_v11, %v89_v11  ;;  %v87_v15 = vld [vmem:[#allocation2 + $0x38] sm:$0xff]  ;;  %v128_v16 = vmul.f32 %v88_v13, %v88_v13  ;;  %v86_v17 = vld [vmem:[#allocation2 + $0x30] sm:$0xff]  ;;  %v85_v19 = vld [vmem:[#allocation2 + $0x28] sm:$0xff] }
  0x11   :  { %v127_v18 = vmul.f32 %v87_v15, %v87_v15  ;;  %v126_v20 = vmul.f32 %v86_v17, %v86_v17  ;;  %v84_v21 = vld [vmem:[#allocation2 + $0x20] sm:$0xff]  ;;  %v125_v22 = vmul.f32 %v85_v19, %v85_v19  ;;  %v83_v23 = vld [vmem:[#allocation2 + $0x18] sm:$0xff]  ;;  %v82_v25 = vld [vmem:[#allocation2 + $0x10] sm:$0xff] }
  0x12   :  { %102 = vmatpush.msra.mxu0 %v93_v2  ;;  %137 = vmatpush.msra.mxu1 %v134_v4  ;;  %v124_v24 = vmul.f32 %v84_v21, %v84_v21  ;;  %v123_v26 = vmul.f32 %v83_v23, %v83_v23  ;;  %v81_v27 = vld [vmem:[#allocation2 + $0x8] sm:$0xff]  ;;  %v122_v28 = vmul.f32 %v82_v25, %v82_v25  ;;  %v80_v29 = vld [vmem:[#allocation2] sm:$0xff]  ;;  %v244_v41 = vld [vmem:[#allocation4 + $0x78] sm:$0xff] }
  0x13   :  { %v121_v30 = vmul.f32 %v81_v27, %v81_v27  ;;  %v78_v31 = vld [vmem:[%s735_s0] sm:$0xff]  ;;  %v120_v32 = vmul.f32 %v80_v29, %v80_v29  ;;  %249 = vmatpush.msra.mxu2 %v244_v41  ;;  %v243_v44 = vld [vmem:[#allocation4 + $0x70] sm:$0xff]  ;;  %v242_v47 = vld [vmem:[#allocation4 + $0x68] sm:$0xff]  ;;  %v284_v49 = vmul.f32 %v244_v41, %v244_v41 }
  0x14   :  { %103 = vmatpush.msra.mxu0 %v92_v5  ;;  %138 = vmatpush.msra.mxu1 %v133_v6  ;;  %v79_v33 = vld [vmem:[%s736_s1] sm:$0xff]  ;;  %v283_v52 = vmul.f32 %v243_v44, %v243_v44  ;;  %v240_v54 = vld [vmem:[#allocation4 + $0x58] sm:$0xff]  ;;  %v282_v55 = vmul.f32 %v242_v47, %v242_v47  ;;  %v239_v57 = vld [vmem:[#allocation4 + $0x50] sm:$0xff] }
  0x15   :  { %v473_v40 = vld [vmem:[%s738_s3] ss:$0 sm:$0xff]  ;;  %250 = vmatpush.msra.mxu2 %v243_v44  ;;  %285 = vmatpush.msra.mxu3 %v284_v49  ;;  %v238_v60 = vld [vmem:[#allocation4 + $0x48] sm:$0xff]  ;;  %v280_v61 = vmul.f32 %v240_v54, %v240_v54  ;;  %v279_v1 = vmul.f32 %v239_v57, %v239_v57  ;;  %v236_v4 = vld [vmem:[#allocation4 + $0x38] sm:$0xff] }
  0x16   :  { %104 = vmatpush.msra.mxu0 %v91_v7  ;;  %139 = vmatpush.msra.mxu1 %v132_v8  ;;  %v241_v51 = vld [vmem:[#allocation4 + $0x60] sm:$0xff]  ;;  %v278_v5 = vmul.f32 %v238_v60, %v238_v60  ;;  %v235_v8 = vld [vmem:[#allocation4 + $0x30] sm:$0xff] }
  0x17   :  { %251 = vmatpush.msra.mxu2 %v242_v47  ;;  %286 = vmatpush.msra.mxu3 %v283_v52  ;;  %v281_v58 = vmul.f32 %v241_v51, %v241_v51  ;;  %v237_v0 = vld [vmem:[#allocation4 + $0x40] sm:$0xff] }
  0x18   :  { %105 = vmatpush.msra.mxu0 %v90_v9  ;;  %140 = vmatpush.msra.mxu1 %v131_v10  ;;  %v277_v9 = vmul.f32 %v237_v0, %v237_v0 }
  0x19   :  { %252 = vmatpush.msra.mxu2 %v241_v51  ;;  %287 = vmatpush.msra.mxu3 %v282_v55 }
  0x1a   :  { %106 = vmatpush.msra.mxu0 %v89_v11  ;;  %141 = vmatpush.msra.mxu1 %v130_v12  ;;  %v234_v11 = vld [vmem:[#allocation4 + $0x28] sm:$0xff] }
  0x1b   :  { %253 = vmatpush.msra.mxu2 %v240_v54  ;;  %288 = vmatpush.msra.mxu3 %v281_v58 }
  0x1c   :  { %107 = vmatpush.msra.mxu0 %v88_v13  ;;  %142 = vmatpush.msra.mxu1 %v129_v14  ;;  %v276_v13 = vmul.f32 %v236_v4, %v236_v4 }
  0x1d   :  { %254 = vmatpush.msra.mxu2 %v239_v57  ;;  %289 = vmatpush.msra.mxu3 %v280_v61 }
  0x1e   :  { %108 = vmatpush.msra.mxu0 %v87_v15  ;;  %143 = vmatpush.msra.mxu1 %v128_v16  ;;  %v233_v15 = vld [vmem:[#allocation4 + $0x20] sm:$0xff]  ;;  %v275_v16 = vmul.f32 %v235_v8, %v235_v8 }
  0x1f   :  { %255 = vmatpush.msra.mxu2 %v238_v60  ;;  %290 = vmatpush.msra.mxu3 %v279_v1 }
  0x20   :  { %109 = vmatpush.msra.mxu0 %v86_v17  ;;  %144 = vmatpush.msra.mxu1 %v127_v18  ;;  %v232_v18 = vld [vmem:[#allocation4 + $0x18] sm:$0xff] }
  0x21   :  { %256 = vmatpush.msra.mxu2 %v237_v0  ;;  %291 = vmatpush.msra.mxu3 %v278_v5 }
  0x22   :  { %110 = vmatpush.msra.mxu0 %v85_v19  ;;  %145 = vmatpush.msra.mxu1 %v126_v20  ;;  %v274_v20 = vmul.f32 %v234_v11, %v234_v11 }
  0x23   :  { %257 = vmatpush.msra.mxu2 %v236_v4  ;;  %292 = vmatpush.msra.mxu3 %v277_v9 }
  0x24   :  { %111 = vmatpush.msra.mxu0 %v84_v21  ;;  %146 = vmatpush.msra.mxu1 %v125_v22  ;;  %v231_v22 = vld [vmem:[#allocation4 + $0x10] sm:$0xff] }
  0x25   :  { %258 = vmatpush.msra.mxu2 %v235_v8  ;;  %293 = vmatpush.msra.mxu3 %v276_v13  ;;  %v474_v13 = vld [vmem:[%s740_s5] ss:$0 sm:$0xff] }
  0x26   :  { %112 = vmatpush.msra.mxu0 %v83_v23  ;;  %147 = vmatpush.msra.mxu1 %v124_v24  ;;  %v230_v23 = vld [vmem:[#allocation4 + $0x8] sm:$0xff]  ;;  %v273_v24 = vmul.f32 %v233_v15, %v233_v15 }
  0x27   :  { %259 = vmatpush.msra.mxu2 %v234_v11  ;;  %294 = vmatpush.msra.mxu3 %v275_v16 }
  0x28   :  { %113 = vmatpush.msra.mxu0 %v82_v25  ;;  %148 = vmatpush.msra.mxu1 %v123_v26  ;;  %v272_v25 = vmul.f32 %v232_v18, %v232_v18 }
  0x29   :  { %260 = vmatpush.msra.mxu2 %v233_v15  ;;  %295 = vmatpush.msra.mxu3 %v274_v20  ;;  %v391_v20 = vld [vmem:[#allocation6 + $0x68] sm:$0xff] }
  0x2a   :  { %114 = vmatpush.msra.mxu0 %v81_v27  ;;  %149 = vmatpush.msra.mxu1 %v122_v28  ;;  %v229_v27 = vld [vmem:[#allocation4] sm:$0xff] }
  0x2b   :  { %261 = vmatpush.msra.mxu2 %v232_v18  ;;  %296 = vmatpush.msra.mxu3 %v273_v24  ;;  %v390_v24 = vld [vmem:[#allocation6 + $0x60] sm:$0xff] }
  0x2c   :  { %115 = vmatpush.msra.mxu0 %v80_v29  ;;  %150 = vmatpush.msra.mxu1 %v121_v30  ;;  %v271_v30 = vmul.f32 %v231_v22, %v231_v22 }
  0x2d   :  { %116 = vmatmul.f32.vlgmr.msra.gmra.mxu0 %v78_v31  ;;  %262 = vmatpush.msra.mxu2 %v231_v22  ;;  %v270_v31 = vmul.f32 %v230_v23, %v230_v23 }
  0x2e   :  { %151 = vmatpush.msra.mxu1 %v120_v32  ;;  %297 = vmatpush.msra.mxu3 %v272_v25 }
  0x2f   :  { %152 = vmatmul.f32.vlgmr.msra.gmra.mxu1 %v79_v33  ;;  %263 = vmatpush.msra.mxu2 %v230_v23 }
  0x30   :  { %298 = vmatpush.msra.mxu3 %v271_v30  ;;  %v388_v30 = vld [vmem:[#allocation6 + $0x50] sm:$0xff] }
  0x31   :  { %264 = vmatpush.msra.mxu2 %v229_v27 }
  0x32   :  { %299 = vmatpush.msra.mxu3 %v270_v31  ;;  %v430_v31 = vmul.f32 %v390_v24, %v390_v24 }
  0xaa   :  { %v117_v42 = vpop.f32.mrf.mxu0 }
  0xab   :  { %v645_v46 = vadd.f32 %v473_v40, %v117_v42 }
  0xac   :  { %v634_v34 = vpop.f32.mrf.mxu1 }
  0xad   :  { %v637_v35 = vadd.f32 1e-08, %v634_v34  ;;  %v220_v60 = vmul.f32 %v645_v46, %v645_v46 }
  0xaf   :  { %476 = vrsqrt.f32 %v637_v35  ;;  %vm163_vm1 = vweird.f32 %v637_v35  ;;  %v221_v1 = vadd.f32 %v220_v60, %v634_v34  ;;  %v381_v60 = vld [vmem:[#allocation6 + $0x18] sm:$0xff] }
  0xb5   :  { %v477_v36 = vpop.eup %476 }
  0xb6   :  { %v158_v37 = vmul.f32 %v477_v36, %v637_v35  ;;  %vm164_vm0 = vweird.f32 %v477_v36 }
  0xb7   :  { %vm165_vm2 = vmor %vm163_vm1, %vm164_vm0 }
  0xb8   :  { %v159_v38 = vmul.f32 %v477_v36, %v158_v37 }
  0xba   :  { %v160_v39 = vmul.f32 0.5, %v159_v38 }
  0xbc   :  { %v161_v43 = vsub.f32 1.5, %v160_v39 }
  0xbe   :  { %v162_v45 = vmul.f32 %v477_v36, %v161_v43 }
  0xc0   :  { %v647_v48 = vsel %vm165_vm2, %v477_v36, %v162_v45  ;;  %v269_v36 = vmul.f32 %v229_v27, %v229_v27  ;;  %v389_v27 = vld [vmem:[#allocation6 + $0x58] sm:$0xff] }
  0xc1   :  { %v651_v50 = vmul.f32 %v647_v48, %v645_v46 }
  0xc2   :  { %300 = vmatpush.msra.mxu3 %v269_v36  ;;  %v429_v36 = vmul.f32 %v389_v27, %v389_v27 }
  0xc3   :  { %v654_v53 = vmul.f32 0.70710677, %v651_v50  ;;  %v212_v37 = vmul.f32 -0.5, %v651_v50 }
  0xc5   :  { %v170_v56 = vmul.f32 %v654_v53, %v654_v53  ;;  %v213_v39 = vmul.f32 %v212_v37, %v651_v50 }
  0xc7   :  { %v658_v59 = vmin.f32 %v170_v56, 16.0  ;;  %v214_v43 = vmul.f32 1.442695, %v213_v39  ;;  %v386_v39 = vld [vmem:[#allocation6 + $0x40] sm:$0xff] }
  0xc9   :  { %v172_v62 = vmul.f32 2.1237322e-06, %v658_v59  ;;  %v183_v63 = vmul.f32 3.8918573e-05, %v658_v59 }
  0xcb   :  { %v173_v2 = vadd.f32 0.00028619796, %v172_v62  ;;  %v184_v3 = vadd.f32 0.001143296, %v183_v63  ;;  %v167_v62 = vmul.f32 %v647_v48, %v637_v35 }
  0xcd   :  { %v174_v6 = vmul.f32 %v173_v2, %v658_v59  ;;  %v185_v7 = vmul.f32 %v184_v3, %v658_v59  ;;  %v223_v4 = vmul.f32 %v167_v62, %v645_v46 }
  0xcf   :  { %v186_v10 = vadd.f32 0.014752088, %v185_v7  ;;  %v175_v12 = vadd.f32 0.0036580483, %v174_v6 }
  0xd1   :  { %v187_v14 = vmul.f32 %v186_v10, %v658_v59  ;;  %v176_v19 = vmul.f32 %v175_v12, %v658_v59 }
  0xd3   :  { %v188_v17 = vadd.f32 0.112945676, %v187_v14  ;;  %v177_v28 = vadd.f32 0.05243302, %v176_v19  ;;  %v393_v14 = vld [vmem:[#allocation6 + $0x78] sm:$0xff] }
  0xd4   :  { %398 = vmatpush.msrb.mxu0 %v393_v14  ;;  %v433_v22 = vmul.f32 %v393_v14, %v393_v14 }
  0xd5   :  { %v189_v21 = vmul.f32 %v188_v17, %v658_v59  ;;  %v178_v33 = vmul.f32 %v177_v28, %v658_v59  ;;  %v392_v17 = vld [vmem:[#allocation6 + $0x70] sm:$0xff]  ;;  %v431_v28 = vmul.f32 %v391_v20, %v391_v20 }
  0xd6   :  { %399 = vmatpush.msrb.mxu0 %v392_v17  ;;  %434 = vmatpush.msrb.mxu1 %v433_v22  ;;  %v432_v25 = vmul.f32 %v392_v17, %v392_v17 }
  0xd7   :  { %v190_v26 = vadd.f32 0.4994258, %v189_v21  ;;  %v179_v38 = vadd.f32 0.18741608, %v178_v33  ;;  %v387_v33 = vld [vmem:[#allocation6 + $0x48] sm:$0xff] }
  0xd8   :  { %400 = vmatpush.msrb.mxu0 %v391_v20  ;;  %435 = vmatpush.msrb.mxu1 %v432_v25 }
  0xd9   :  { %v191_v29 = vmul.f32 %v190_v26, %v658_v59  ;;  %v180_v41 = vmul.f32 %v179_v38, %v658_v59 }
  0xda   :  { %401 = vmatpush.msrb.mxu0 %v390_v24  ;;  %436 = vmatpush.msrb.mxu1 %v431_v28 }
  0xdb   :  { %v192_v32 = vadd.f32 1.0, %v191_v29  ;;  %v181_v47 = vadd.f32 1.1283791, %v180_v41 }
  0xdc   :  { %402 = vmatpush.msrb.mxu0 %v389_v27  ;;  %437 = vmatpush.msrb.mxu1 %v430_v31 }
  0xdd   :  { %478 = vrcp.f32 %v192_v32  ;;  %v204_v45 = vand.u32 2147483648, %v192_v32  ;;  %v202_v51 = vand.u32 2147483647, %v192_v32  ;;  %vm198_vm4 = vweird.f32 %v192_v32 }
  0xde   :  { %480 = vpow2.f32 %v214_v43  ;;  %v182_v55 = vmul.f32 %v181_v47, %v654_v53  ;;  %403 = vmatpush.msrb.mxu0 %v388_v30  ;;  %438 = vmatpush.msrb.mxu1 %v429_v36  ;;  %v385_v43 = vld [vmem:[#allocation6 + $0x38] sm:$0xff] }
  0xdf   :  { %v205_v54 = vor.u32 1.1754944e-38, %v204_v45  ;;  %vm203_vm6 = vcmp.eq.f32.partialorder %v202_v51, 8.507059e+37  ;;  %v426_v51 = vmul.f32 %v386_v39, %v386_v39 }
  0xe0   :  { %404 = vmatpush.msrb.mxu0 %v387_v33 }
  0xe2   :  { %405 = vmatpush.msrb.mxu0 %v386_v39 }
  0xe3   :  { %v479_v40 = vpop.eup %478 }
  0xe4   :  { %v194_v42 = vmul.f32 %v479_v40, %v192_v32  ;;  %vm199_vm3 = vweird.f32 %v479_v40  ;;  %v481_v58 = vpop.eup %480  ;;  %406 = vmatpush.msrb.mxu0 %v385_v43 }
  0xe5   :  { %vm200_vm5 = vmor %vm198_vm4, %vm199_vm3  ;;  %v216_v63 = vmul.f32 0.3989423, %v481_v58 }
  0xe6   :  { %v195_v44 = vsub.f32 1.0, %v194_v42 }
  0xe7   :  { %v218_v3 = vmul.f32 %v216_v63, %v167_v62  ;;  %v224_v6 = vmul.f32 %v223_v4, %v216_v63  ;;  %v378_v4 = vld [vmem:[#allocation6] sm:$0xff] }
  0xe8   :  { %v196_v49 = vmul.f32 %v479_v40, %v195_v44  ;;  %v427_v44 = vmul.f32 %v387_v33, %v387_v33 }
  0xea   :  { %v197_v52 = vadd.f32 %v479_v40, %v196_v49  ;;  %v384_v49 = vld [vmem:[#allocation6 + $0x30] sm:$0xff] }
  0xeb   :  { %407 = vmatpush.msrb.mxu0 %v384_v49  ;;  %v424_v58 = vmul.f32 %v384_v49, %v384_v49 }
  0xec   :  { %v201_v56 = vsel %vm200_vm5, %v479_v40, %v197_v52  ;;  %v428_v40 = vmul.f32 %v388_v30, %v388_v30 }
  0xed   :  { %v206_v50 = vsel %vm203_vm6, %v205_v54, %v201_v56  ;;  %v383_v54 = vld [vmem:[#allocation6 + $0x28] sm:$0xff]  ;;  %v425_v56 = vmul.f32 %v385_v43, %v385_v43 }
  0xee   :  { %v207_v57 = vmul.f32 %v206_v50, %v182_v55  ;;  %439 = vmatpush.msrb.mxu1 %v428_v40  ;;  %408 = vmatpush.msrb.mxu0 %v383_v54  ;;  %v423_v62 = vmul.f32 %v383_v54, %v383_v54 }
  0xf0   :  { %v466_v59 = vclamps-f32 %v207_v57, 1.0  ;;  %440 = vmatpush.msrb.mxu1 %v427_v44  ;;  %v382_v57 = vld [vmem:[#allocation6 + $0x20] sm:$0xff] }
  0xf1   :  { %409 = vmatpush.msrb.mxu0 %v382_v57 }
  0xf2   :  { %v210_v61 = vadd.f32 1.0, %v466_v59  ;;  %441 = vmatpush.msrb.mxu1 %v426_v51  ;;  %v475_v51 = vld [vmem:[%s742_s7] ss:$0 sm:$0xff] }
  0xf3   :  { %410 = vmatpush.msrb.mxu0 %v381_v60 }
  0xf4   :  { %v211_v0 = vmul.f32 0.5, %v210_v61  ;;  %442 = vmatpush.msrb.mxu1 %v425_v56 }
  0xf6   :  { %v222_v2 = vmul.f32 %v221_v1, %v211_v0  ;;  %v217_v53 = vmul.f32 %v211_v0, %v645_v46  ;;  %443 = vmatpush.msrb.mxu1 %v424_v58  ;;  %v380_v0 = vld [vmem:[#allocation6 + $0x10] sm:$0xff]  ;;  %v422_v1 = vmul.f32 %v382_v57, %v382_v57 }
  0xf7   :  { %411 = vmatpush.msrb.mxu0 %v380_v0 }
  0xf8   :  { %v219_v5 = vadd.f32 %v218_v3, %v217_v53  ;;  %v225_v8 = vadd.f32 %v224_v6, %v222_v2  ;;  %444 = vmatpush.msrb.mxu1 %v423_v62  ;;  %v379_v53 = vld [vmem:[#allocation6 + $0x8] sm:$0xff] }
  0xf9   :  { %412 = vmatpush.msrb.mxu0 %v379_v53 }
  0xfa   :  { %v226_v7 = vmul.f32 %v219_v5, %v219_v5  ;;  %265 = vmatmul.f32.vlgmr.msra.gmra.mxu2 %v219_v5  ;;  %445 = vmatpush.msrb.mxu1 %v422_v1  ;;  %v421_v5 = vmul.f32 %v381_v60, %v381_v60 }
  0xfb   :  { %413 = vmatpush.msrb.mxu0 %v378_v4 }
  0xfc   :  { %v227_v9 = vsub.f32 %v225_v8, %v226_v7  ;;  %446 = vmatpush.msrb.mxu1 %v421_v5  ;;  %v420_v7 = vmul.f32 %v380_v0, %v380_v0  ;;  %v419_v8 = vmul.f32 %v379_v53, %v379_v53 }
  0xfe   :  { %v228_v10 = vmax.f32 %v227_v9, 0.0  ;;  %447 = vmatpush.msrb.mxu1 %v420_v7 }
 0x100   :  { %301 = vmatmul.f32.vlgmr.msra.gmra.mxu3 %v228_v10  ;;  %448 = vmatpush.msrb.mxu1 %v419_v8 }
 0x17d   :  { %v266_v15 = vpop.f32.mrf.mxu2 }
 0x17e   :  { %v691_v19 = vadd.f32 %v474_v13, %v266_v15 }
 0x183   :  { %v680_v11 = vpop.f32.mrf.mxu3 }
 0x184   :  { %v683_v35 = vadd.f32 1e-08, %v680_v11 }
 0x186   :  { %482 = vrsqrt.f32 %v683_v35  ;;  %vm312_vm8 = vweird.f32 %v683_v35 }
 0x18c   :  { %v483_v34 = vpop.eup %482 }
 0x18d   :  { %v307_v48 = vmul.f32 %v483_v34, %v683_v35  ;;  %vm313_vm7 = vweird.f32 %v483_v34 }
 0x18e   :  { %vm314_vm9 = vmor %vm312_vm8, %vm313_vm7 }
 0x18f   :  { %v308_v12 = vmul.f32 %v483_v34, %v307_v48 }
 0x191   :  { %v309_v46 = vmul.f32 0.5, %v308_v12 }
 0x193   :  { %v310_v16 = vsub.f32 1.5, %v309_v46 }
 0x195   :  { %v311_v18 = vmul.f32 %v483_v34, %v310_v16 }
 0x197   :  { %v693_v21 = vsel %vm314_vm9, %v483_v34, %v311_v18  ;;  %v418_v34 = vmul.f32 %v378_v4, %v378_v4 }
 0x198   :  { %v697_v23 = vmul.f32 %v693_v21, %v691_v19 }
 0x199   :  { %449 = vmatpush.msrb.mxu1 %v418_v34 }
 0x19a   :  { %v700_v26 = vmul.f32 0.70710677, %v697_v23  ;;  %v361_v48 = vmul.f32 -0.5, %v697_v23 }
 0x19c   :  { %v319_v29 = vmul.f32 %v700_v26, %v700_v26  ;;  %v362_v46 = vmul.f32 %v361_v48, %v697_v23 }
 0x19e   :  { %v704_v32 = vmin.f32 %v319_v29, 16.0  ;;  %v363_v16 = vmul.f32 1.442695, %v362_v46 }
 0x1a0   :  { %v321_v37 = vmul.f32 2.1237322e-06, %v704_v32  ;;  %v332_v38 = vmul.f32 3.8918573e-05, %v704_v32 }
 0x1a2   :  { %v322_v41 = vadd.f32 0.00028619796, %v321_v37  ;;  %v333_v42 = vadd.f32 0.001143296, %v332_v38  ;;  %v369_v38 = vmul.f32 %v691_v19, %v691_v19 }
 0x1a4   :  { %v323_v45 = vmul.f32 %v322_v41, %v704_v32  ;;  %v334_v47 = vmul.f32 %v333_v42, %v704_v32  ;;  %v370_v40 = vadd.f32 %v369_v38, %v680_v11 }
 0x1a6   :  { %v335_v52 = vadd.f32 0.014752088, %v334_v47  ;;  %v324_v55 = vadd.f32 0.0036580483, %v323_v45 }
 0x1a8   :  { %v336_v50 = vmul.f32 %v335_v52, %v704_v32  ;;  %v325_v61 = vmul.f32 %v324_v55, %v704_v32 }
 0x1aa   :  { %v337_v59 = vadd.f32 0.112945676, %v336_v50  ;;  %v326_v3 = vadd.f32 0.05243302, %v325_v61 }
 0x1ac   :  { %v338_v63 = vmul.f32 %v337_v59, %v704_v32  ;;  %v327_v10 = vmul.f32 %v326_v3, %v704_v32 }
 0x1ae   :  { %v339_v2 = vadd.f32 0.4994258, %v338_v63  ;;  %v328_v12 = vadd.f32 0.18741608, %v327_v10 }
 0x1b0   :  { %v340_v6 = vmul.f32 %v339_v2, %v704_v32  ;;  %v329_v14 = vmul.f32 %v328_v12, %v704_v32  ;;  %v316_v32 = vmul.f32 %v693_v21, %v683_v35 }
 0x1b2   :  { %v341_v9 = vadd.f32 1.0, %v340_v6  ;;  %v330_v20 = vadd.f32 1.1283791, %v329_v14  ;;  %v372_v41 = vmul.f32 %v316_v32, %v691_v19 }
 0x1b4   :  { %484 = vrcp.f32 %v341_v9  ;;  %v353_v18 = vand.u32 2147483648, %v341_v9  ;;  %v351_v24 = vand.u32 2147483647, %v341_v9  ;;  %vm347_vm11 = vweird.f32 %v341_v9 }
 0x1b5   :  { %486 = vpow2.f32 %v363_v16  ;;  %v331_v28 = vmul.f32 %v330_v20, %v700_v26 }
 0x1b6   :  { %v354_v27 = vor.u32 1.1754944e-38, %v353_v18  ;;  %vm352_vm13 = vcmp.eq.f32.partialorder %v351_v24, 8.507059e+37 }
 0x1ba   :  { %v485_v13 = vpop.eup %484 }
 0x1bb   :  { %v343_v15 = vmul.f32 %v485_v13, %v341_v9  ;;  %vm348_vm10 = vweird.f32 %v485_v13  ;;  %v487_v31 = vpop.eup %486 }
 0x1bc   :  { %vm349_vm12 = vmor %vm347_vm11, %vm348_vm10  ;;  %v365_v37 = vmul.f32 0.3989423, %v487_v31 }
 0x1bd   :  { %v344_v17 = vsub.f32 1.0, %v343_v15 }
 0x1be   :  { %v373_v42 = vmul.f32 %v372_v41, %v365_v37  ;;  %v367_v44 = vmul.f32 %v365_v37, %v316_v32 }
 0x1bf   :  { %v345_v22 = vmul.f32 %v485_v13, %v344_v17 }
 0x1c1   :  { %v346_v25 = vadd.f32 %v485_v13, %v345_v22 }
 0x1c3   :  { %v350_v29 = vsel %vm349_vm12, %v485_v13, %v346_v25 }
 0x1c4   :  { %v355_v23 = vsel %vm352_vm13, %v354_v27, %v350_v29 }
 0x1c5   :  { %v356_v30 = vmul.f32 %v355_v23, %v331_v28 }
 0x1c7   :  { %v467_v33 = vclamps-f32 %v356_v30, 1.0 }
 0x1c9   :  { %v359_v36 = vadd.f32 1.0, %v467_v33 }
 0x1cb   :  { %v360_v39 = vmul.f32 0.5, %v359_v36 }
 0x1cd   :  { %v371_v26 = vmul.f32 %v370_v40, %v360_v39  ;;  %v366_v43 = vmul.f32 %v360_v39, %v691_v19 }
 0x1cf   :  { %v374_v45 = vadd.f32 %v373_v42, %v371_v26  ;;  %v368_v47 = vadd.f32 %v367_v44, %v366_v43 }
 0x1d1   :  { %v375_v49 = vmul.f32 %v368_v47, %v368_v47  ;;  %414 = vmatmul.f32.vlgmr.msrb.gmra.mxu0 %v368_v47 }
 0x1d3   :  { %v376_v35 = vsub.f32 %v374_v45, %v375_v49 }
 0x1d5   :  { %v377_v21 = vmax.f32 %v376_v35, 0.0 }
 0x1d7   :  { %450 = vmatmul.f32.vlgmr.msrb.gmra.mxu1 %v377_v21 }
 0x24e   :  { %v415_v52 = vpop.f32.mrf.mxu0 }
 0x24f   :  { %v416_v11 = vadd.f32 %v475_v51, %v415_v52 }
 0x251   :  { %454 = vst [vmem:[%s743_s8] sm:$0xff] %v416_v11 }
 0x254   :  { %v451_v54 = vpop.f32.mrf.mxu1 }
 0x255   :  { %455 = vst [vmem:[%s744_s9] sm:$0xff] %v451_v54 }
 0x256   :  { %464 = vsyncpa [#allocation3], 1 }
 0x257   :  { %465 = vsyncpa [#allocation5], 1 }

</bundles_post_ra>
